<compile_context>
chip_gen: v7x
topology: tpu7x:2x2x1
jax: 0.10.0
libtpu: 0.0.40
codegen_flags: <defaults>
</compile_context>

<pallas_src>
import math

import jax
import jax.numpy as jnp
from jax import lax
from jax.experimental import pallas as pl
from jax.experimental.pallas import tpu as pltpu


def _round_up(a, b):
    return ((a + b - 1) // b) * b


def _cdiv(a, b):
    return -(-a // b)


def _tpu_generation_info():
    """(tensorcores_per_device, per_core_vmem_bytes) with conservative fallbacks."""
    vmem_cap = 64 << 20                     # safe floor (v7x per-TC VMEM)
    try:
        info = pltpu.get_tpu_info()
        vmem_cap = int(getattr(info, "vmem_capacity_bytes", vmem_cap)) or vmem_cap
    except Exception:
        pass
    n_cores = 1
    try:
        kind = jax.devices()[0].device_kind.lower()
        if "7" in kind:                     # v7x: 2 TensorCores share one device
            n_cores = 2
    except Exception:
        pass
    return n_cores, vmem_cap


def _accumulate_step(x_ref, t_ref, g_acc, sse_acc, *, global_k, tk, d, mask_needed):
    """One streamed feature chunk: SSE partial + one-matmul Gram partial."""
    # Upcast to f32 so the MXU sees f32 operands even for bf16 inputs (matches
    # an f32 reference up to accumulation order).
    x = x_ref[...].astype(jnp.float32)
    t = t_ref[...].astype(jnp.float32)
    if mask_needed:
        # Ragged / duplicated chunks: zero out columns beyond the true D.
        col = global_k * tk + lax.broadcasted_iota(jnp.int32, x.shape, 1)
        valid = col < d
        x = jnp.where(valid, x, 0.0)
        t = jnp.where(valid, t, 0.0)
    u = x - t                                  # reused for SSE and Gram terms
    v = x + t
    # Scalar SSE accumulation: reduce in-register, one (1,1) load+store per step.
    sse_acc[...] += jnp.reshape(jnp.sum(u * u), (1, 1))
    # Single MXU matmul per tile: G += u @ v^T  (contract the feature axis of
    # both operands directly -> no explicit transpose through the XLU).
    dims = (((1,), (1,)), ((), ()))
    g_acc[...] += lax.dot_general(u, v, dims, preferred_element_type=jnp.float32)


def _make_fused_kernel(*, b, d, tk, n_k, alpha, mask_needed):
    """Single-TensorCore path: 1-D reduction grid, scalars finalized in-kernel."""
    inv_bd = 1.0 / float(b * d)
    inv_b2 = 1.0 / float(b * b)

    def kernel(x_ref, t_ref, combined_ref, recon_ref, g_acc, sse_acc):
        k = pl.program_id(0)

        @pl.when(k == 0)
        def _init():
            g_acc[...] = jnp.zeros_like(g_acc)
            sse_acc[...] = jnp.zeros_like(sse_acc)

        _accumulate_step(x_ref, t_ref, g_acc, sse_acc,
                         global_k=k, tk=tk, d=d, mask_needed=mask_needed)

        @pl.when(k == n_k - 1)
        def _finalize():
            g = g_acc[...]                       # G = (x-t)(x+t)^T ; gdiff = (G+G^T)/2
            # sum(gdiff^2) = 0.5*sum(G*G) + 0.5*trace(G @ G)   (transpose-free)
            gg = lax.dot_general(g, g, (((1,), (0,)), ((), ())),
                                 preferred_element_type=jnp.float32)
            row = lax.broadcasted_iota(jnp.int32, (b, b), 0)
            col = lax.broadcasted_iota(jnp.int32, (b, b), 1)
            trace_gg = jnp.sum(jnp.where(row == col, gg, 0.0))
            rel_sse = 0.5 * jnp.sum(g * g) + 0.5 * trace_gg
            recon = sse_acc[...] * inv_bd                      # (1, 1)
            rel = jnp.reshape(rel_sse, (1, 1)) * inv_b2
            recon_ref[...] = recon
            combined_ref[...] = (1.0 - alpha) * recon + alpha * rel

    return kernel


def _make_partial_kernel(*, d, tk, n_k, mask_needed):
    """2-TensorCore (v7x) path: per-slice Gram / SSE partials."""
    def kernel(x_ref, t_ref, g_ref, sse_ref, g_acc, sse_acc):
        c = pl.program_id(0)
        k = pl.program_id(1)

        @pl.when(k == 0)
        def _init():
            g_acc[...] = jnp.zeros_like(g_acc)
            sse_acc[...] = jnp.zeros_like(sse_acc)

        _accumulate_step(x_ref, t_ref, g_acc, sse_acc,
                         global_k=c * n_k + k, tk=tk, d=d, mask_needed=mask_needed)

        @pl.when(k == n_k - 1)
        def _finalize():
            g_ref[...] = jnp.expand_dims(g_acc[...], 0)
            sse_ref[...] = jnp.reshape(sse_acc[...], (1, 1, 1))

    return kernel


def relational_loss(inputs, targets, alpha=None, *, tk=None, n_split=None):
    """inputs/targets: [B, C, H, W] (any trailing shape).
    Returns (combined_loss, reconstruction), matching RelationalLoss.forward
    with MSE loss and Gram-matrix relation.  `alpha` is static (as in the
    PyTorch constructor)."""
    alpha = 1.0 if alpha is None else float(alpha)
    b = inputs.shape[0]
    d = int(math.prod(inputs.shape[1:]))

    x = jnp.reshape(inputs, (b, d))        # torch .view(B, -1); no padding copies
    t = jnp.reshape(targets, (b, d))

    n_cores, vmem_cap = _tpu_generation_info()
    if n_split is None:
        n_split = 2 if n_cores >= 2 else 1
    n_split = max(1, min(int(n_split), 2))

    dtype_bytes = jnp.dtype(x.dtype).itemsize
    row_sub = _round_up(b, 8)                         # sublane-padded rows in VMEM

    # ---- generation-aware VMEM budget ------------------------------------
    big_vmem = vmem_cap >= (100 << 20)                # v5e / v6e: 128 MiB per TC
    vmem_budget = (96 << 20) if big_vmem else (40 << 20)
    vmem_cap_limit = (100 << 20) if big_vmem else (48 << 20)

    gram_bytes = _round_up(b, 8) * max(128, _round_up(b, 128)) * 4
    fixed_bytes = gram_bytes + (64 << 10) + (2 << 20)     # accumulators + slack
    if n_split > 1:
        fixed_bytes += 4 * gram_bytes                     # partial-G output buffers

    # ---- feature-tile selection (lane-aligned, budget-driven, no hard cap) --
    col_bytes = 2 * 3 * row_sub * max(dtype_bytes, 4)     # 2 inputs x up-to-3 buffers
    tk_budget = max(128, ((vmem_budget - fixed_bytes) // col_bytes) // 128 * 128)
    tk_need = _round_up(_cdiv(d, n_split), 128)
    if tk is None:
        tk = min(tk_need, tk_budget)
        if n_split > 1 and d > n_split * 128:
            # v7x: ensure >= 2 k-steps per parallel slice so DMA overlaps compute.
            if _cdiv(_cdiv(d, tk), n_split) < 2:
                tk = max(128, _round_up(_cdiv(d, 2 * n_split), 128))
    else:
        tk = max(128, (int(tk) // 128) * 128)
        tk = min(tk, _round_up(d, 128))

    n_chunks = _cdiv(d, tk)
    n_k = _cdiv(n_chunks, n_split)
    pad_chunks = n_split * n_k > n_chunks     # clamped duplicate chunks (masked to 0)
    ragged = (d % tk) != 0
    mask_needed = ragged or pad_chunks
    multibuffer = n_k >= 3

    # ---- explicit VMEM limit (v5e scoped default is only 16 MiB) -----------
    n_buf = 3 if multibuffer else 2
    usage = 2 * n_buf * row_sub * tk * max(dtype_bytes, 4) + fixed_bytes
    vmem_limit = int(min(vmem_cap_limit, max(32 << 20, int(usage * 1.3) + (2 << 20))))

    def _in_spec(index_map):
        if multibuffer:
            try:
                return pl.BlockSpec((b, tk), index_map, pipeline_mode=pl.Buffered(3))
            except (TypeError, AttributeError):   # fall back to default double-buffer
                pass
        return pl.BlockSpec((b, tk), index_map)

    if n_split == 1:
        # -------- single-TensorCore path: fully fused, scalar outputs --------
        kernel = _make_fused_kernel(b=b, d=d, tk=tk, n_k=n_k, alpha=alpha,
                                    mask_needed=mask_needed)
        combined, recon = pl.pallas_call(
            kernel,
            out_shape=(jax.ShapeDtypeStruct((1, 1), jnp.float32),
                       jax.ShapeDtypeStruct((1, 1), jnp.float32)),
            grid_spec=pltpu.PrefetchScalarGridSpec(
                num_scalar_prefetch=0,
                grid=(n_k,),
                in_specs=[_in_spec(lambda k: (0, k)),
                          _in_spec(lambda k: (0, k))],
                out_specs=[pl.BlockSpec((1, 1), lambda k: (0, 0)),
                           pl.BlockSpec((1, 1), lambda k: (0, 0))],
                scratch_shapes=[pltpu.VMEM((b, b), jnp.float32),   # Gram accumulator
                                pltpu.VMEM((1, 1), jnp.float32)],  # SSE accumulator
            ),
            compiler_params=pltpu.CompilerParams(
                dimension_semantics=("arbitrary",),
                vmem_limit_bytes=vmem_limit),
        )(x, t)
        return jnp.reshape(combined, ()), jnp.reshape(recon, ())

    # -------- 2-TensorCore (v7x) path: per-slice partials + tiny epilogue -----
    if pad_chunks:
        def in_idx(c, k):
            return (0, jnp.minimum(c * n_k + k, n_chunks - 1))
    else:
        def in_idx(c, k):
            return (0, c * n_k + k)

    kernel = _make_partial_kernel(d=d, tk=tk, n_k=n_k, mask_needed=mask_needed)
    g_parts, sse_parts = pl.pallas_call(
        kernel,
        out_shape=(jax.ShapeDtypeStruct((n_split, b, b), jnp.float32),
                   jax.ShapeDtypeStruct((n_split, 1, 1), jnp.float32)),
        grid_spec=pltpu.PrefetchScalarGridSpec(
            num_scalar_prefetch=0,
            grid=(n_split, n_k),
            in_specs=[_in_spec(in_idx), _in_spec(in_idx)],
            out_specs=[pl.BlockSpec((1, b, b), lambda c, k: (c, 0, 0)),
                       pl.BlockSpec((1, 1, 1), lambda c, k: (c, 0, 0))],
            scratch_shapes=[pltpu.VMEM((b, b), jnp.float32),
                            pltpu.VMEM((1, 1), jnp.float32)],
        ),
        compiler_params=pltpu.CompilerParams(
            dimension_semantics=("parallel", "arbitrary"),
            vmem_limit_bytes=vmem_limit),
    )(x, t)

    g = jnp.sum(g_parts, axis=0)
    gdiff = 0.5 * (g + g.T)                    # = X X^T - T T^T  (exact)
    rel = jnp.sum(gdiff * gdiff) / float(b * b)
    recon = jnp.sum(sse_parts) / float(b * d)
    combined = (1.0 - alpha) * recon + alpha * rel
    return combined, recon


def _reference(inputs, targets, alpha):
    a = 1.0 if alpha is None else alpha
    b = inputs.shape[0]
    xr = jnp.reshape(inputs, (b, -1)).astype(jnp.float32)
    tr = jnp.reshape(targets, (b, -1)).astype(jnp.float32)
    recon = jnp.mean((xr - tr) ** 2)
    rel = jnp.mean((xr @ xr.T - tr @ tr.T) ** 2)
    return (1.0 - a) * recon + a * rel, recon


if __name__ == "__main__":
    key = jax.random.PRNGKey(0)
    k1, k2, k3, k4 = jax.random.split(key, 4)

    def check(inp, tgt, alpha, **kw):
        c, r = relational_loss(inp, tgt, alpha, **kw)
        c = jax.block_until_ready(c)
        r = jax.block_until_ready(r)
        rc, rr = _reference(inp, tgt, alpha)
        assert jnp.allclose(c, rc, rtol=1e-4, atol=1e-5), (kw, c, rc)
        assert jnp.allclose(r, rr, rtol=1e-4, atol=1e-5), (kw, r, rr)

    inputs = jax.random.normal(k1, (2, 4, 16, 16), dtype=jnp.float32)
    targets = jax.random.normal(k2, (2, 4, 16, 16), dtype=jnp.float32)

    # Case 1: canonical shape, automatic tiling / automatic core-split.
    check(inputs, targets, 0.7)

    # Case 2: forced small tile on the 1-D path -> multi-chunk streamed
    # reduction with Buffered(3) inputs and in-kernel finalize.
    check(inputs, targets, 0.7, tk=128, n_split=1)

    # Case 3: ragged feature dim (C*H*W = 105), alpha=None -> in-kernel lane mask.
    inputs3 = jax.random.normal(k3, (2, 3, 5, 7), dtype=jnp.float32)
    targets3 = jax.random.normal(k4, (2, 3, 5, 7), dtype=jnp.float32)
    check(inputs3, targets3, None)

    # Case 4: forced 2-way "parallel" split (v7x code path), automatic tile.
    check(inputs, targets, 0.3, n_split=2)

    # Case 5: forced split with a tile that doesn't divide D -> clamped
    # index_map + masked duplicate chunk path.
    check(inputs, targets, 0.3, tk=384, n_split=2)

    print("KERNEL_OK")
</pallas_src>

<mosaic_0001>
module attributes {stable_mosaic.version = 11 : i64} {
  func.func @kernel(%arg0: i32, %arg1: memref<2x1024xf32, #tpu.memory_space<vmem>>, %arg2: memref<2x1024xf32, #tpu.memory_space<vmem>>, %arg3: memref<1x1xf32, #tpu.memory_space<vmem>>, %arg4: memref<1x1xf32, #tpu.memory_space<vmem>>, %arg5: memref<2x2xf32, #tpu.memory_space<vmem>>, %arg6: memref<1x1xf32, #tpu.memory_space<vmem>>) attributes {dimension_semantics = [#tpu.dimension_semantics<arbitrary>], iteration_bounds = array<i64: 1>, scalar_prefetch = 0 : i64, scratch_operands = 2 : i64, tpu.core_type = #tpu.core_type<tc>, window_params = [{transform_indices = @transform_0, window_bounds = array<i64: 2, 1024>}, {transform_indices = @transform_1, window_bounds = array<i64: 2, 1024>}, {pipeline_mode = #tpu.pipeline_mode<synchronous>, transform_indices = @transform_2, window_bounds = array<i64: 1, 1>}, {pipeline_mode = #tpu.pipeline_mode<synchronous>, transform_indices = @transform_3, window_bounds = array<i64: 1, 1>}]} {
    %c0_i32 = arith.constant 0 : i32
    %0 = arith.cmpi eq, %arg0, %c0_i32 : i32
    %1 = arith.extui %0 : i1 to i32
    %c0_i32_0 = arith.constant 0 : i32
    %2 = arith.cmpi ne, %1, %c0_i32_0 : i32
    scf.if %2 {
      %cst_15 = arith.constant 0.000000e+00 : f32
      %23 = vector.broadcast %cst_15 : f32 to vector<2x2xf32>
      %c0_16 = arith.constant 0 : index
      %c0_17 = arith.constant 0 : index
      %24 = vector.load %arg5[%c0_16, %c0_17] : memref<2x2xf32, #tpu.memory_space<vmem>>, vector<2x2xf32>
      tpu.vector_store %arg5[%c0_16, %c0_17], %23 {strides = array<i32>} : memref<2x2xf32, #tpu.memory_space<vmem>>, vector<2x2xf32>,
      %cst_18 = arith.constant 0.000000e+00 : f32
      %25 = vector.broadcast %cst_18 : f32 to vector<1x1xf32>
      %c0_19 = arith.constant 0 : index
      %c0_20 = arith.constant 0 : index
      %26 = vector.load %arg6[%c0_19, %c0_20] : memref<1x1xf32, #tpu.memory_space<vmem>>, vector<1x1xf32>
      tpu.vector_store %arg6[%c0_19, %c0_20], %25 {strides = array<i32>} : memref<1x1xf32, #tpu.memory_space<vmem>>, vector<1x1xf32>,
    } else {
    }
    %c0 = arith.constant 0 : index
    %c0_1 = arith.constant 0 : index
    %3 = vector.load %arg1[%c0, %c0_1] : memref<2x1024xf32, #tpu.memory_space<vmem>>, vector<2x1024xf32>
    %c0_2 = arith.constant 0 : index
    %c0_3 = arith.constant 0 : index
    %4 = vector.load %arg2[%c0_2, %c0_3] : memref<2x1024xf32, #tpu.memory_space<vmem>>, vector<2x1024xf32>
    %5 = arith.subf %3, %4 : vector<2x1024xf32>
    %6 = arith.addf %3, %4 : vector<2x1024xf32>
    %c0_4 = arith.constant 0 : index
    %c0_5 = arith.constant 0 : index
    %7 = vector.load %arg6[%c0_4, %c0_5] : memref<1x1xf32, #tpu.memory_space<vmem>>, vector<1x1xf32>
    %8 = arith.mulf %5, %5 : vector<2x1024xf32>
    %9 = vector.shape_cast %8 : vector<2x1024xf32> to vector<1x2x1024xf32>
    %cst = arith.constant dense<0.000000e+00> : vector<1xf32>
    %10 = vector.multi_reduction <add>, %9, %cst [1, 2] : vector<1x2x1024xf32> to vector<1xf32>
    %11 = vector.shape_cast %10 : vector<1xf32> to vector<1x1x1xf32>
    %12 = vector.extract %11[0, 0, 0] : f32 from vector<1x1x1xf32>
    %13 = vector.broadcast %12 : f32 to vector<1x1xf32>
    %14 = arith.addf %7, %13 : vector<1x1xf32>
    %c0_6 = arith.constant 0 : index
    %c0_7 = arith.constant 0 : index
    %15 = vector.load %arg6[%c0_6, %c0_7] : memref<1x1xf32, #tpu.memory_space<vmem>>, vector<1x1xf32>
    tpu.vector_store %arg6[%c0_6, %c0_7], %14 {strides = array<i32>} : memref<1x1xf32, #tpu.memory_space<vmem>>, vector<1x1xf32>,
    %c0_8 = arith.constant 0 : index
    %c0_9 = arith.constant 0 : index
    %16 = vector.load %arg5[%c0_8, %c0_9] : memref<2x2xf32, #tpu.memory_space<vmem>>, vector<2x2xf32>
    %cst_10 = arith.constant dense<0.000000e+00> : vector<2x2xf32>
    %17 = tpu.matmul %5, %6, %cst_10 {dimension_numbers = #tpu.dot_dimension_numbers<[1], [1], [0], [0], [0, 0, 1, 0], [], []>} : vector<2x1024xf32>, vector<2x1024xf32>, vector<2x2xf32> -> vector<2x2xf32>
    %18 = arith.addf %16, %17 : vector<2x2xf32>
    %c0_11 = arith.constant 0 : index
    %c0_12 = arith.constant 0 : index
    %19 = vector.load %arg5[%c0_11, %c0_12] : memref<2x2xf32, #tpu.memory_space<vmem>>, vector<2x2xf32>
    tpu.vector_store %arg5[%c0_11, %c0_12], %18 {strides = array<i32>} : memref<2x2xf32, #tpu.memory_space<vmem>>, vector<2x2xf32>,
    %c0_i32_13 = arith.constant 0 : i32
    %20 = arith.cmpi eq, %arg0, %c0_i32_13 : i32
    %21 = arith.extui %20 : i1 to i32
    %c0_i32_14 = arith.constant 0 : i32
    %22 = arith.cmpi ne, %21, %c0_i32_14 : i32
    scf.if %22 {
      %c0_15 = arith.constant 0 : index
      %c0_16 = arith.constant 0 : index
      %23 = vector.load %arg5[%c0_15, %c0_16] : memref<2x2xf32, #tpu.memory_space<vmem>>, vector<2x2xf32>
      %cst_17 = arith.constant dense<0.000000e+00> : vector<2x2xf32>
      %24 = tpu.matmul %23, %23, %cst_17 {dimension_numbers = #tpu.dot_dimension_numbers<[1], [0], [0], [1], [0, 0, 1, 1], [], []>} : vector<2x2xf32>, vector<2x2xf32>, vector<2x2xf32> -> vector<2x2xf32>
      %25 = tpu.iota {dimensions = array<i32: 0>} : vector<2x2xi32>
      %26 = tpu.iota {dimensions = array<i32: 1>} : vector<2x2xi32>
      %27 = arith.cmpi eq, %25, %26 : vector<2x2xi32>
      %cst_18 = arith.constant 0.000000e+00 : f32
      %28 = vector.broadcast %cst_18 : f32 to vector<2x2xf32>
      %29 = arith.select %27, %24, %28 : vector<2x2xi1>, vector<2x2xf32>
      %30 = vector.shape_cast %29 : vector<2x2xf32> to vector<1x2x2xf32>
      %cst_19 = arith.constant dense<0.000000e+00> : vector<1xf32>
      %31 = vector.multi_reduction <add>, %30, %cst_19 [1, 2] : vector<1x2x2xf32> to vector<1xf32>
      %32 = vector.shape_cast %31 : vector<1xf32> to vector<1x1x1xf32>
      %33 = vector.extract %32[0, 0, 0] : f32 from vector<1x1x1xf32>
      %34 = arith.mulf %23, %23 : vector<2x2xf32>
      %35 = vector.shape_cast %34 : vector<2x2xf32> to vector<1x2x2xf32>
      %cst_20 = arith.constant dense<0.000000e+00> : vector<1xf32>
      %36 = vector.multi_reduction <add>, %35, %cst_20 [1, 2] : vector<1x2x2xf32> to vector<1xf32>
      %37 = vector.shape_cast %36 : vector<1xf32> to vector<1x1x1xf32>
      %38 = vector.extract %37[0, 0, 0] : f32 from vector<1x1x1xf32>
      %cst_21 = arith.constant 5.000000e-01 : f32
      %39 = arith.mulf %cst_21, %38 : f32
      %cst_22 = arith.constant 5.000000e-01 : f32
      %40 = arith.mulf %cst_22, %33 : f32
      %41 = arith.addf %39, %40 : f32
      %c0_23 = arith.constant 0 : index
      %c0_24 = arith.constant 0 : index
      %42 = vector.load %arg6[%c0_23, %c0_24] : memref<1x1xf32, #tpu.memory_space<vmem>>, vector<1x1xf32>
      %cst_25 = arith.constant 4.8828125E-4 : f32
      %43 = vector.broadcast %cst_25 : f32 to vector<1x1xf32>
      %44 = arith.mulf %42, %43 : vector<1x1xf32>
      %45 = vector.broadcast %41 : f32 to vector<1x1xf32>
      %cst_26 = arith.constant 2.500000e-01 : f32
      %46 = vector.broadcast %cst_26 : f32 to vector<1x1xf32>
      %47 = arith.mulf %45, %46 : vector<1x1xf32>
      %c0_27 = arith.constant 0 : index
      %c0_28 = arith.constant 0 : index
      %48 = vector.load %arg4[%c0_27, %c0_28] : memref<1x1xf32, #tpu.memory_space<vmem>>, vector<1x1xf32>
      tpu.vector_store %arg4[%c0_27, %c0_28], %44 {strides = array<i32>} : memref<1x1xf32, #tpu.memory_space<vmem>>, vector<1x1xf32>,
      %cst_29 = arith.constant 3.000000e-01 : f32
      %49 = vector.broadcast %cst_29 : f32 to vector<1x1xf32>
      %50 = arith.mulf %49, %44 : vector<1x1xf32>
      %cst_30 = arith.constant 0.699999988 : f32
      %51 = vector.broadcast %cst_30 : f32 to vector<1x1xf32>
      %52 = arith.mulf %51, %47 : vector<1x1xf32>
      %53 = arith.addf %50, %52 : vector<1x1xf32>
      %c0_31 = arith.constant 0 : index
      %c0_32 = arith.constant 0 : index
      %54 = vector.load %arg3[%c0_31, %c0_32] : memref<1x1xf32, #tpu.memory_space<vmem>>, vector<1x1xf32>
      tpu.vector_store %arg3[%c0_31, %c0_32], %53 {strides = array<i32>} : memref<1x1xf32, #tpu.memory_space<vmem>>, vector<1x1xf32>,
    } else {
    }
    return
  }
  func.func @transform_0(%arg0: i32) -> (i32, i32) {
    %c0_i32 = arith.constant 0 : i32
    %c0_i32_0 = arith.constant 0 : i32
    return %c0_i32, %arg0 : i32, i32
  }
  func.func @transform_1(%arg0: i32) -> (i32, i32) {
    %c0_i32 = arith.constant 0 : i32
    %c0_i32_0 = arith.constant 0 : i32
    return %c0_i32, %arg0 : i32, i32
  }
  func.func @transform_2(%arg0: i32) -> (i32, i32) {
    %c0_i32 = arith.constant 0 : i32
    %c0_i32_0 = arith.constant 0 : i32
    %c0_i32_1 = arith.constant 0 : i32
    return %c0_i32, %c0_i32_0 : i32, i32
  }
  func.func @transform_3(%arg0: i32) -> (i32, i32) {
    %c0_i32 = arith.constant 0 : i32
    %c0_i32_0 = arith.constant 0 : i32
    %c0_i32_1 = arith.constant 0 : i32
    return %c0_i32, %c0_i32_0 : i32, i32
  }
}

</mosaic_0001>

<bundles_post_ra>
// kernel: tpu_custom_call.1
= control target key start
LH: loop header
LB: loop body
LE: loop exit
PB: predicated region body
PF: predicated region fallthrough
CT: control target
= control target key end

     0   :  { %9 = vsyncpa [#allocation5], 0  ;;  %s900_s0 = inlined_call_operand.hbm [shape: f32[2,1024], index: 0, kind: input, shape index: {}]   ;;  %s901_s1 = inlined_call_operand.hbm [shape: f32[2,1024], index: 1, kind: input, shape index: {}]   ;;  %s902_s2 = inlined_call_operand.hbm [shape: f32[1,1], index: 2, kind: output, shape index: {0}]   ;;  %s903_s3 = inlined_call_operand.hbm [shape: f32[1,1], index: 3, kind: output, shape index: {1}]  }
   0x1   :  { %10 = vsyncpa [#allocation8], 0 }
   0x2   :  { %11 = vsyncpa [#allocation6], 0 }
   0x3   :  { %12 = vsyncpa [#allocation11], 0  ;;  %s770_s12 = smov [#allocation4]   ;;  %s771_s14 = smov [#allocation7]  }
   0x4   :  { %s19_s13 = sshll.u32 %s770_s12, 4  ;;  %s29_s15 = sshll.u32 %s771_s14, 4  ;;  %s20_s13 = int_to_ptr.vmem [resolvable:$true] %s19_s13  ;;  %s30_s15 = int_to_ptr.vmem [resolvable:$true] %s29_s15 }
   0x5   :  { %s674_s18 = scalar_lea.hbm %s900_s0, 256 }
   0x6   :  { %p675_p0 = scmp.ne.s32.totalorder %s900_s0, %s674_s18  ;;  %p678_p1 = scmp.lt.u32.totalorder %s674_s18, %s900_s0 }
   0x8   :  { %p680_p2 = pnand %p678_p1, %p675_p0 }
   0xa   :  { %683 = shalt.err (!%p680_p2)
}
   0xb   :  { %s684_s23 = scalar_lea.vmem %s20_s13, 256  ;;  %p689_p4 = scmp.lt.s32.totalorder %s20_s13, %s20_s13 }
   0xc   :  { %p685_p3 = scmp.ne.s32.totalorder %s20_s13, %s684_s23  ;;  %p690_p5 = scmp.lt.s32.totalorder %s684_s23, %s684_s23 }
   0xe   :  { %p691_p6 = por %p690_p5, %p689_p4 }
  0x10   :  { %p692_p7 = pnand %p691_p6, %p685_p3 }
  0x12   :  { %695 = shalt.err (!%p692_p7)
}
  0x13   :  { %22 = dma.hbm_to_vmem [thread:$0]  %s900_s0, 256, %s20_s13, [#allocation5]  }
  0x14   :  { %s696_s28 = scalar_lea.hbm %s901_s1, 256 }
  0x15   :  { %p697_p8 = scmp.ne.s32.totalorder %s901_s1, %s696_s28  ;;  %p700_p9 = scmp.lt.u32.totalorder %s696_s28, %s901_s1 }
  0x17   :  { %p702_p10 = pnand %p700_p9, %p697_p8 }
  0x19   :  { %705 = shalt.err (!%p702_p10)
}
  0x1a   :  { %s706_s6 = scalar_lea.vmem %s30_s15, 256  ;;  %p711_p12 = scmp.lt.s32.totalorder %s30_s15, %s30_s15 }
  0x1b   :  { %p707_p11 = scmp.ne.s32.totalorder %s30_s15, %s706_s6  ;;  %p712_p13 = scmp.lt.s32.totalorder %s706_s6, %s706_s6 }
  0x1d   :  { %p713_p0 = por %p712_p13, %p711_p12 }
  0x1f   :  { %p714_p1 = pnand %p713_p0, %p707_p11 }
  0x21   :  { %717 = shalt.err (!%p714_p1)
}
  0x22   :  { %32 = dma.hbm_to_vmem [thread:$0]  %s901_s1, 256, %s30_s15, [#allocation8]  }
  0x23   :  { %762 = dma.done.wait [#allocation5], 256  }
  0x24   :  { %763 = vsyncadd [#allocation5], 4294967040 }
  0x25   :  { %764 = dma.done.wait [#allocation8], 256  }
  0x26   :  { %765 = vsyncadd [#allocation8], 4294967040  ;;  %v64_v0 = vlaneseq  ;;  %v772_v1 = vmov 1983009808   ;;  %v47_v6 = vld [vmem:[#allocation4] sm:$0xff]  ;;  %v49_v7 = vld [vmem:[#allocation7] sm:$0xff] }
  0x27   :  { %v62_v2 = vunpack.c.l.s4 %v772_v1  ;;  %v48_v8 = vld [vmem:[#allocation4 + $0x8] sm:$0xff]  ;;  %v827_v9 = vsub.f32 %v47_v6, %v49_v7  ;;  %v53_v10 = vadd.f32 %v49_v7, %v47_v6  ;;  %v50_v11 = vld [vmem:[#allocation7 + $0x8] sm:$0xff]  ;;  %vm43_vm0 = vcmask 9216   ;;  %s775_s8 = smov [#allocation10]  }
  0x28   :  { %v822_v3 = vshrl.u32 %v64_v0, 7  ;;  %v829_v12 = vsub.f32 %v48_v8, %v50_v11  ;;  %v54_v13 = vadd.f32 %v50_v11, %v48_v8  ;;  %v773_v34 = vmov 0.0   ;;  %s638_s9 = sshll.u32 %s775_s8, 4  ;;  %s639_s9 = int_to_ptr.vmem [resolvable:$true] %s638_s9 }
  0x29   :  { %v63_v4 = vunpack.c.0.s8 %v62_v2  ;;  %v178_v15 = vcombine.high %v53_v10, %v53_v10  ;;  %v134_v18 = vcombine.high %v827_v9, %v827_v9  ;;  %44 = vst.msk [vmem:[#allocation2] sm:$0x3] %vm43_vm0, %v773_v34  ;;  %vm774_vm1 = vmmov 0   ;;  %s718_s10 = scalar_lea.vmem %s639_s9, 16  ;;  %s722_s11 = scalar_lea.vmem %s639_s9, 32 }
  0x2a   :  { %v195_v19 = vcombine.high %v54_v13, %v54_v13  ;;  %v151_v28 = vcombine.high %v829_v12, %v829_v12  ;;  %vm102_vm2 = vcmask 1041408   ;;  %vm507_vm3 = vcmask 15360   ;;  %p719_p2 = scmp.ne.s32.totalorder %s639_s9, %s718_s10  ;;  %p723_p3 = scmp.lt.s32.totalorder %s639_s9, %s639_s9 }
  0x2b   :  { %v825_v5 = vsub.s32 %v63_v4, %v822_v3  ;;  %v56_v51 = vmul.f32 %v827_v9, %v827_v9  ;;  %v57_v55 = vmul.f32 %v829_v12, %v829_v12  ;;  %vm45_vm5 = vcmask 0   ;;  %p724_p4 = scmp.lt.s32.totalorder %s722_s11, %s718_s10 }
  0x2c   :  { %46 = vst.msk [vmem:[#allocation3] sm:$0x1] %vm45_vm5, %v773_v34 }
  0x2d   :  { %v185_v14 = vrot.slane %v53_v10, %v825_v5  ;;  %v141_v16 = vrot.slane %v827_v9, %v825_v5  ;;  %v202_v17 = vrot.slane %v54_v13, %v825_v5  ;;  %v158_v20 = vrot.slane %v829_v12, %v825_v5  ;;  %p725_p5 = por %p724_p4, %p723_p3 }
  0x2e   :  { %v192_v22 = vrot.slane %v178_v15, %v825_v5  ;;  %v148_v25 = vrot.slane %v134_v18, %v825_v5  ;;  %v209_v26 = vrot.slane %v195_v19, %v825_v5  ;;  %v165_v32 = vrot.slane %v151_v28, %v825_v5 }
  0x2f   :  { %v193_v21 = vcombine.high %v185_v14, %v185_v14  ;;  %v149_v23 = vcombine.high %v141_v16, %v141_v16  ;;  %v210_v24 = vcombine.high %v202_v17, %v202_v17  ;;  %v166_v31 = vcombine.high %v158_v20, %v158_v20  ;;  %p726_p6 = pnand %p725_p5, %p719_p2 }
  0x30   :  { %v194_v27 = vcombine.high %v192_v22, %v192_v22  ;;  %v150_v29 = vcombine.high %v148_v25, %v148_v25  ;;  %v211_v30 = vcombine.high %v209_v26, %v209_v26  ;;  %v167_v33 = vcombine.high %v165_v32, %v165_v32  ;;  %v131_v43 = vld [vmem:[#allocation2] sm:$0x3] }
  0x31   :  { %220 = vmatprep.subr.mxu0 %v193_v21  ;;  %284 = vmatprep.mubr.f32.mxu0 %v149_v23  ;;  %v67_v52 = vrot.slane %v56_v51, %v825_v5  ;;  %v60_v53 = vcombine.high %v56_v51, %v56_v51  ;;  %v77_v61 = vcombine.high %v57_v55, %v57_v55 }
  0x32   :  { %221 = vmatpush1.xpose.msra.mxu0 %v185_v14  ;;  %290 = vmatprep.subr.mxu1 %v194_v27  ;;  %v84_v62 = vrot.slane %v57_v55, %v825_v5 }
  0x33   :  { %360 = vmatprep.subr.mxu0 %v210_v24  ;;  %291 = vmatpush1.xpose.msra.mxu1 %v192_v22  ;;  %v75_v54 = vcombine.high %v67_v52, %v67_v52  ;;  %v74_v56 = vrot.slane %v60_v53, %v825_v5  ;;  %v103_v57 = vsel %vm102_vm2, %v67_v52, 0.0  ;;  %v91_v2 = vrot.slane %v77_v61, %v825_v5 }
  0x34   :  { %354 = vmatprep.mubr.f32.mxu1 %v150_v29  ;;  %430 = vmatprep.subr.mxu1 %v211_v30  ;;  %v92_v4 = vcombine.high %v84_v62, %v84_v62  ;;  %v110_v7 = vsel %vm102_vm2, %v84_v62, 0.0  ;;  %v586_v5 = vand.u32 127, %v64_v0  ;;  %v55_v0 = vld [vmem:[#allocation3] sm:$0x1] }
  0x35   :  { %285 = vmatmul.mubr.f32.vlgmr.msra.gmra.mrb[0].mxu0 %v141_v16  ;;  %v104_v58 = vsel %vm102_vm2, %v75_v54, 0.0  ;;  %v76_v60 = vcombine.high %v74_v56, %v74_v56  ;;  %v106_v63 = vsel %vm102_vm2, %v74_v56, 0.0  ;;  %v93_v9 = vcombine.high %v91_v2, %v91_v2 }
  0x36   :  { %361 = vmatpush1.xpose.msra.mxu0 %v202_v17  ;;  %424 = vmatprep.mubr.f32.mxu0 %v166_v31  ;;  %v105_v59 = vadd.f32 %v104_v58, %v103_v57  ;;  %v112_v10 = vsel %vm102_vm2, %v92_v4, 0.0  ;;  %v114_v12 = vsel %vm102_vm2, %v91_v2, 0.0  ;;  %vm587_vm4 = vcmp.eq.s32.totalorder %v822_v3, %v586_v5 }
  0x37   :  { %355 = vmatmul.mubr.f32.vlgmr.msra.gmra.mrb[0].mxu1 %v148_v25  ;;  %656 = vmatprep.subr.mxu0 %v773_v34  ;;  %v108_v6 = vsel %vm102_vm2, %v76_v60, 0.0  ;;  %v116_v14 = vsel %vm102_vm2, %v93_v9, 0.0 }
  0x38   :  { %431 = vmatpush1.xpose.msra.mxu1 %v209_v26  ;;  %494 = vmatprep.mubr.f32.mxu1 %v167_v33  ;;  %v107_v1 = vadd.f32 %v106_v63, %v105_v59 }
  0x39   :  { %425 = vmatmul.mubr.f32.vlgmr.msra.gmra.mrb[2].mxu0 %v158_v20 }
  0x3a   :  { %658 = vmatprep.mubr.msk.f32.mxu0 %vm774_vm1, %v773_v34  ;;  %v109_v8 = vadd.f32 %v108_v6, %v107_v1 }
  0x3b   :  { %495 = vmatmul.mubr.f32.vlgmr.msra.gmra.mrb[2].mxu1 %v165_v32 }
  0x3c   :  { %v111_v11 = vadd.f32 %v110_v7, %v109_v8 }
  0x3e   :  { %v113_v13 = vadd.f32 %v112_v10, %v111_v11 }
  0x40   :  { %v115_v15 = vadd.f32 %v114_v12, %v113_v13 }
  0x42   :  { %v117_v16 = vadd.f32 %v116_v14, %v115_v15 }
  0x44   :  { %118 = vadd.xlane.f32.xlu0 %v117_v16 }
  0xd1   :  { %v119_v17 = vpop.xlane.xlu0 %118 }
  0xd2   :  { %v120_v18 = vrot.slane %v119_v17, 4 }
  0xd4   :  { %v121_v23 = vadd.f32 %v120_v18, %v119_v17 }
  0xd6   :  { %v122_v24 = vrot.slane %v121_v23, 2 }
  0xd8   :  { %v123_v25 = vadd.f32 %v122_v24, %v121_v23 }
  0xda   :  { %v124_v26 = vrot.slane %v123_v25, 1 }
  0xdc   :  { %v125_v27 = vadd.f32 %v124_v26, %v123_v25 }
  0xde   :  { %661 = vpush %v125_v27 }
 0x108   :  { %v286_v35 = vpop.f32.mrb[0].mxu0 }
 0x109   :  { %v288_v36 = vpop.f32.mrb[1].mxu0 }
 0x10a   :  { %v356_v37 = vpop.f32.mrb[0].mxu1 }
 0x10b   :  { %v357_v38 = vadd.f32 %v356_v37, %v286_v35  ;;  %v358_v39 = vpop.f32.mrb[1].mxu1 }
 0x10c   :  { %v426_v40 = vpop.f32.mrb[2].mxu0 }
 0x10d   :  { %v427_v41 = vadd.f32 %v426_v40, %v357_v38  ;;  %v428_v42 = vpop.f32.mrb[3].mxu0 }
 0x10e   :  { %v496_v44 = vpop.f32.mrb[2].mxu1 }
 0x10f   :  { %v497_v45 = vadd.f32 %v496_v44, %v427_v41  ;;  %v498_v46 = vpop.f32.mrb[3].mxu1  ;;  %s662_s1 = spop %661 }
 0x110   :  { %v127_v3 = vstv %s662_s1 }
 0x111   :  { %v500_v47 = vadd.f32 %v497_v45, %v131_v43  ;;  %v128_v28 = vadd.f32 %v127_v3, %v55_v0 }
 0x113   :  { %502 = vst.msk [vmem:[#allocation2] sm:$0x3] %vm43_vm0, %v500_v47 }
 0x114   :  { %130 = vst.msk [vmem:[#allocation3] sm:$0x1] %vm45_vm5, %v128_v28 }
 0x11a   :  { %v506_v48 = vld [vmem:[#allocation2] sm:$0x3] }
 0x11b   :  { %657 = vmatpush3.msk.msra.mxu0 %vm102_vm2, %v506_v48  ;;  %v599_v49 = vmul.f32 %v506_v48, %v506_v48  ;;  %v613_v29 = vld [vmem:[#allocation3] sm:$0x1] }
 0x11c   :  { %659 = vmatmul.mubr.msk.f32.vlgmr.msra.gmra.mrb[4].mxu0 %vm507_vm3, %v506_v48  ;;  %v614_v30 = vmul.f32 0.00048828125, %v613_v29 }
 0x11d   :  { %v600_v50 = vsel %vm43_vm0, %v599_v49, 0.0 }
 0x11e   :  { %601 = vadd.xlane.f32.xlu1 %v600_v50  ;;  %617 = vst.msk [vmem:[#allocation10] sm:$0x1] %vm45_vm5, %v614_v30 }
 0x1ef   :  { %v579_v19 = vpop.f32.mrb[4].mxu0 }
 0x1f0   :  { %v588_v20 = vsel %vm587_vm4, %v579_v19, 0.0  ;;  %v660_v21 = vpop.f32.mrb[5].mxu0 }
 0x1f1   :  { %v589_v22 = vsel %vm43_vm0, %v588_v20, 0.0 }
 0x1f2   :  { %590 = vadd.xlane.f32.xlu0 %v589_v22 }
 0x1f3   :  { %729 = shalt.err (!%p726_p6)
}
 0x1f4   :  { %s730_s14 = scalar_lea.hbm %s903_s3, 16 }
 0x1f5   :  { %p731_p7 = scmp.ne.s32.totalorder %s903_s3, %s730_s14  ;;  %p734_p8 = scmp.lt.u32.totalorder %s730_s14, %s903_s3 }
 0x1f7   :  { %p736_p9 = pnand %p734_p8, %p731_p7 }
 0x1f9   :  { %739 = shalt.err (!%p736_p9)
}
 0x1fa   :  { %641 = dma.vmem_to_hbm [thread:$0]  %s639_s9, 16, %s903_s3, [#allocation11]   ;;  %v602_v31 = vpop.xlane.xlu1 %601  ;;  %v618_v47 = vmul.f32 0.3, %v614_v30 }
 0x1fb   :  { %v603_v32 = vrot.slane %v602_v31, 4  ;;  %s776_s25 = smov [#allocation9]  }
 0x1fc   :  { %s628_s26 = sshll.u32 %s776_s25, 4  ;;  %s629_s26 = int_to_ptr.vmem [resolvable:$true] %s628_s26 }
 0x1fd   :  { %v604_v33 = vadd.f32 %v603_v32, %v602_v31  ;;  %s740_s27 = scalar_lea.vmem %s629_s26, 16  ;;  %s744_s28 = scalar_lea.vmem %s629_s26, 32 }
 0x1fe   :  { %p741_p10 = scmp.ne.s32.totalorder %s629_s26, %s740_s27  ;;  %p745_p11 = scmp.lt.s32.totalorder %s629_s26, %s629_s26 }
 0x1ff   :  { %v605_v34 = vrot.slane %v604_v33, 2  ;;  %p746_p12 = scmp.lt.s32.totalorder %s744_s28, %s740_s27 }
 0x201   :  { %v606_v38 = vadd.f32 %v605_v34, %v604_v33  ;;  %p747_p13 = por %p746_p12, %p745_p11 }
 0x203   :  { %v607_v41 = vrot.slane %v606_v38, 1  ;;  %p748_p0 = pnand %p747_p13, %p741_p10 }
 0x205   :  { %v608_v44 = vadd.f32 %v607_v41, %v606_v38 }
 0x27f   :  { %v591_v35 = vpop.xlane.xlu0 %590 }
 0x280   :  { %v592_v36 = vrot.slane %v591_v35, 4 }
 0x282   :  { %v593_v37 = vadd.f32 %v592_v36, %v591_v35 }
 0x284   :  { %v594_v39 = vrot.slane %v593_v37, 2 }
 0x286   :  { %v595_v40 = vadd.f32 %v594_v39, %v593_v37 }
 0x288   :  { %v596_v42 = vrot.slane %v595_v40, 1 }
 0x28a   :  { %v597_v43 = vadd.f32 %v596_v42, %v595_v40 }
 0x28c   :  { %663 = vpush %v597_v43 }
 0x28d   :  { %665 = vpush %v608_v44 }
 0x2bd   :  { %s664_s21 = spop %663 }
 0x2be   :  { %s611_s22 = smul.f32 0.5, %s664_s21  ;;  %s666_s23 = spop %665 }
 0x2bf   :  { %s610_s3 = smul.f32 0.5, %s666_s23 }
 0x2c1   :  { %s612_s24 = sadd.f32 %s611_s22, %s610_s3 }
 0x2c3   :  { %v615_v45 = vstv %s612_s24 }
 0x2c4   :  { %v616_v46 = vmul.f32 0.25, %v615_v45 }
 0x2c6   :  { %v619_v48 = vmul.f32 0.7, %v616_v46 }
 0x2c8   :  { %v620_v49 = vadd.f32 %v619_v48, %v618_v47 }
 0x2ca   :  { %621 = vst.msk [vmem:[#allocation9] sm:$0x1] %vm45_vm5, %v620_v49 }
 0x2cb   :  { %751 = shalt.err (!%p748_p0)
}
 0x2cc   :  { %s752_s4 = scalar_lea.hbm %s902_s2, 16 }
 0x2cd   :  { %p753_p1 = scmp.ne.s32.totalorder %s902_s2, %s752_s4  ;;  %p756_p2 = scmp.lt.u32.totalorder %s752_s4, %s902_s2 }
 0x2cf   :  { %p758_p3 = pnand %p756_p2, %p753_p1 }
 0x2d1   :  { %761 = shalt.err (!%p758_p3)
}
 0x2d2   :  { %631 = dma.vmem_to_hbm [thread:$0]  %s629_s26, 16, %s902_s2, [#allocation6]  }
 0x2d3   :  { %766 = dma.done.wait [#allocation6], 16  }
 0x2d4   :  { %767 = vsyncadd [#allocation6], 4294967280 }
 0x2d5   :  { %768 = dma.done.wait [#allocation11], 16  }
 0x2d6   :  { %769 = vsyncadd [#allocation11], 4294967280 }
 0x2d7   :  { %648 = vsyncpa [#allocation5], 1 }
 0x2d8   :  { %649 = vsyncpa [#allocation8], 1 }
 0x2d9   :  { %650 = vsyncpa [#allocation6], 1 }
 0x2da   :  { %651 = vsyncpa [#allocation11], 1 }

</bundles_post_ra>
